<compile_context>
chip_gen: v6e
topology: v6e:2x2x1
jax: 0.10.0
libtpu: 0.0.40
codegen_flags: <defaults>
</compile_context>

<pallas_src>
import math

import jax
import jax.numpy as jnp
from jax import lax
from jax.experimental import pallas as pl

# ----- problem sizes (small, consistent with the module's forward) -----
B = 2                           # batch
C_IN = 4                        # image channels
H = W = 16                      # spatial
PATCH = 4                       # patch size
HP = H // PATCH
WP = W // PATCH
P = HP * WP                     # 16 image tokens per image
D_PATCH = C_IN * PATCH * PATCH  # 64
D = 32                          # embedding dim
D_MLP = 64                      # decoder MLP hidden
NUM_CLASSES = 3                 # masks per dataset
NUM_TOKENS = 4                  # learnable prompt tokens per class
T = NUM_CLASSES * NUM_TOKENS    # 12 prompt tokens per image

BP = B * P                      # 32 batch-folded image tokens
BT = B * T                      # 24 batch-folded prompt tokens
BC = B * NUM_CLASSES            # 6 batch-folded mask tokens

assert B == 2, "block-diagonal mask uses a B==2 compare fast-path (use iota // T for general B)"

# ----- packed weight buffer layout: row-stacked, 8-sublane aligned, lane 0 -----
_o = 0
R_WPATCH = _o; _o += D_PATCH    # patch-embed weight      [D_PATCH, D]
R_WK     = _o; _o += D          # key projection           [D, D]
R_WV     = _o; _o += D          # value projection         [D, D]
R_WM     = _o; _o += D          # image mask-projection    [D, D]
R_WO     = _o; _o += D          # attention out proj       [D, D]
R_W1     = _o; _o += D          # MLP in                   [D, D_MLP]
R_W2     = _o; _o += D_MLP      # MLP out                  [D_MLP, D]
R_WIOU   = _o; _o += D          # IoU head                 [D, 1]
R_BIAS   = _o; _o += 8          # rows: b_patch | b1 | b2 (sublane-packed)
R_TOTAL  = _o                   # 328
W_LANES  = 128


# ---------------------------------------------------------------------------
# Single fused, grid-free kernel: patch-embed + cross-attn decoder + heads.
# Inputs: patches [BP, D_PATCH], tok|q packed [2*BT, D], weights [R_TOTAL, 128].
# Outputs: mask logits over all image tokens [BT, BP], IoU logits [BT, 1].
# ---------------------------------------------------------------------------
def sam_forward_kernel(patches_ref, tokq_ref, w_ref, masks_ref, iou_ref):
    f32 = jnp.float32

    # --- image encoder: patch embedding, whole batch folded on sublanes ---
    img = jnp.dot(patches_ref[...], w_ref[R_WPATCH:R_WPATCH + D_PATCH, :D],
                  preferred_element_type=f32)
    img = img + w_ref[R_BIAS:R_BIAS + 1, :D]                          # [BP, D]

    # --- K / V / mask-projection of image tokens (lane-0 aligned weights) ---
    k = jnp.dot(img, w_ref[R_WK:R_WK + D, :D], preferred_element_type=f32)
    v = jnp.dot(img, w_ref[R_WV:R_WV + D, :D], preferred_element_type=f32)
    img_m = jnp.dot(img, w_ref[R_WM:R_WM + D, :D], preferred_element_type=f32)

    # --- prompt tokens: original + pre-scaled query, sublane-packed input ---
    tok = tokq_ref[:BT, :]                                            # [BT, D]
    q = tokq_ref[BT:, :]                                              # [BT, D], = tok @ Wq / sqrt(D)

    # scores: transposed contraction handled natively by the MXU (no k.T)
    scores = lax.dot_general(q, k, (((1,), (1,)), ((), ())),
                             preferred_element_type=f32)              # [BT, BP]

    # block-diagonal mask (B == 2): tokens only attend to their own image
    row_img = lax.broadcasted_iota(jnp.int32, (BT, BP), 0) >= T
    col_img = lax.broadcasted_iota(jnp.int32, (BT, BP), 1) >= P
    scores = jnp.where(row_img == col_img, scores, -1e30)

    # exact f32 softmax
    scores = scores - jnp.max(scores, axis=-1, keepdims=True)
    e = jnp.exp(scores)
    attn = e / jnp.sum(e, axis=-1, keepdims=True)

    ctx = jnp.dot(attn, v, preferred_element_type=f32)                # [BT, D]
    tok2 = tok + jnp.dot(ctx, w_ref[R_WO:R_WO + D, :D], preferred_element_type=f32)

    # --- per-token MLP (residual), biases are sublane rows at lane 0 ---
    h = jnp.maximum(
        jnp.dot(tok2, w_ref[R_W1:R_W1 + D, :D_MLP], preferred_element_type=f32)
        + w_ref[R_BIAS + 1:R_BIAS + 2, :D_MLP], 0.0)
    tok3 = (tok2
            + jnp.dot(h, w_ref[R_W2:R_W2 + D_MLP, :D], preferred_element_type=f32)
            + w_ref[R_BIAS + 2:R_BIAS + 3, :D])                       # [BT, D]

    # --- mask logits over all image tokens: MXU-native transposed contraction ---
    masks_ref[...] = lax.dot_general(tok3, img_m, (((1,), (1,)), ((), ())),
                                     preferred_element_type=f32)      # [BT, BP]
    # --- IoU head: tiny extra matmul on the otherwise-idle MXU ---
    iou_ref[...] = jnp.dot(tok3, w_ref[R_WIOU:R_WIOU + D, :1],
                           preferred_element_type=f32)                # [BT, 1]


def fused_forward(patches, tokq, wbuf):
    return pl.pallas_call(
        sam_forward_kernel,
        out_shape=(jax.ShapeDtypeStruct((BT, BP), jnp.float32),
                   jax.ShapeDtypeStruct((BT, 1), jnp.float32)),
    )(patches, tokq, wbuf)


# ---------------------------------------------------------------------------
# Glue: patch extraction (plain JAX, runs inside the jitted forward)
# ---------------------------------------------------------------------------
def extract_patches(x):
    # x: NCHW [B, C, H, W] -> [B, P, C*PATCH*PATCH]
    b, c, h, w = x.shape
    x = x.reshape(b, c, h // PATCH, PATCH, w // PATCH, PATCH)
    x = x.transpose(0, 2, 4, 1, 3, 5)
    return x.reshape(b, (h // PATCH) * (w // PATCH), c * PATCH * PATCH)


# ---------------------------------------------------------------------------
# SegmentationModel: learnable prompts per dataset + SAM-like forward.
# ---------------------------------------------------------------------------
class SegmentationModel:
    def __init__(self, prompts):
        self.dataset_names = list(prompts.keys())
        self.num_classes = list(prompts.values())[0].shape[0]
        self.learnable_prompts = prompts
        # prompt_sampler.p == [0, 0, 1.0, 0]: always use the learnable prompts.

        key = jax.random.PRNGKey(42)
        ks = jax.random.split(key, 10)
        init = lambda k, shape: (0.02 * jax.random.normal(k, shape)).astype(jnp.float32)

        # One row-stacked f32 weight buffer -> single input DMA descriptor.
        wbuf = jnp.zeros((R_TOTAL, W_LANES), jnp.float32)
        wbuf = wbuf.at[R_WPATCH:R_WPATCH + D_PATCH, :D].set(init(ks[0], (D_PATCH, D)))
        wbuf = wbuf.at[R_WK:R_WK + D, :D].set(init(ks[2], (D, D)))
        wbuf = wbuf.at[R_WV:R_WV + D, :D].set(init(ks[3], (D, D)))
        wbuf = wbuf.at[R_WM:R_WM + D, :D].set(init(ks[7], (D, D)))
        wbuf = wbuf.at[R_WO:R_WO + D, :D].set(init(ks[4], (D, D)))
        wbuf = wbuf.at[R_W1:R_W1 + D, :D_MLP].set(init(ks[5], (D, D_MLP)))
        wbuf = wbuf.at[R_W2:R_W2 + D_MLP, :D].set(init(ks[6], (D_MLP, D)))
        wbuf = wbuf.at[R_WIOU:R_WIOU + D, :1].set(init(ks[8], (D, 1)))
        # bias rows (R_BIAS .. R_BIAS+2 = b_patch | b1 | b2) stay zero-initialized.

        self.params = {"wbuf": wbuf, "wq": init(ks[1], (D, D))}
        self._fwd = jax.jit(self._forward_impl)

    def _forward_impl(self, batch, prompts):
        x = batch.astype(jnp.float32)
        patches = extract_patches(x).reshape(BP, D_PATCH)                 # [B*P, D_PATCH]

        # prompt tokens: row = b*T + c*NUM_TOKENS + t.
        tok1 = prompts.reshape(T, D).astype(jnp.float32)                  # [T, D]
        # hoisted, input-independent query projection (+ 1/sqrt(D) scale)
        q1 = (tok1 @ self.params["wq"]) * (1.0 / math.sqrt(D))            # [T, D]
        tokq = jnp.concatenate([jnp.tile(tok1, (B, 1)),
                                jnp.tile(q1, (B, 1))], axis=0)            # [2*B*T, D]

        masks_all, iou_all = fused_forward(patches, tokq, self.params["wbuf"])

        # per-class mask token = first learnable token of each class (rows ::NUM_TOKENS),
        # then keep each image's own block of image tokens (discard cross-image block).
        mask_rows = masks_all[::NUM_TOKENS]                               # [B*C, B*P]
        masks_bd = mask_rows.reshape(B, NUM_CLASSES, B, P)
        masks = masks_bd[jnp.arange(B), :, jnp.arange(B), :]              # [B, C, P]
        iou = iou_all[::NUM_TOKENS, 0].reshape(B, NUM_CLASSES)
        return {
            "masks": masks.reshape(B, NUM_CLASSES, HP, WP),               # low-res mask logits
            "iou_pred": iou,                                              # [B, NUM_CLASSES]
        }

    def forward(self, batch, dataset_index):
        """Get the learnable prompts for the dataset and make predictions."""
        prompts = self.learnable_prompts[self.dataset_names[dataset_index]]
        return self._fwd(batch, prompts)

    __call__ = forward


if __name__ == "__main__":
    key = jax.random.PRNGKey(0)
    k_img, k_p0, k_p1 = jax.random.split(key, 3)

    # deterministic example inputs
    x = jax.random.normal(k_img, (B, C_IN, H, W), dtype=jnp.float32)      # NCHW image batch
    prompts = {
        "dataset_a": 0.1 * jax.random.normal(k_p0, (NUM_CLASSES, NUM_TOKENS, D), dtype=jnp.float32),
        "dataset_b": 0.1 * jax.random.normal(k_p1, (NUM_CLASSES, NUM_TOKENS, D), dtype=jnp.float32),
    }

    model = SegmentationModel(prompts)
    out = model(x, dataset_index=0)
    jax.block_until_ready(out)

    assert out["masks"].shape == (B, NUM_CLASSES, HP, WP)
    assert out["iou_pred"].shape == (B, NUM_CLASSES)
    print("KERNEL_OK")
</pallas_src>

<mosaic_0001>
module attributes {stable_mosaic.version = 11 : i64} {
  func.func @sam_forward_kernel(%arg0: memref<32x64xf32, #tpu.memory_space<vmem>>, %arg1: memref<48x32xf32, #tpu.memory_space<vmem>>, %arg2: memref<328x128xf32, #tpu.memory_space<vmem>>, %arg3: memref<24x32xf32, #tpu.memory_space<vmem>>, %arg4: memref<24x1xf32, #tpu.memory_space<vmem>>) attributes {dimension_semantics = [], scalar_prefetch = 0 : i64, scratch_operands = 0 : i64, tpu.core_type = #tpu.core_type<tc>} {
    %c0 = arith.constant 0 : index
    %c0_0 = arith.constant 0 : index
    %0 = vector.load %arg0[%c0, %c0_0] : memref<32x64xf32, #tpu.memory_space<vmem>>, vector<32x64xf32>
    %c0_1 = arith.constant 0 : index
    %c0_2 = arith.constant 0 : index
    %1 = vector.load %arg2[%c0_1, %c0_2] : memref<328x128xf32, #tpu.memory_space<vmem>>, vector<64x32xf32>
    %cst = arith.constant dense<0.000000e+00> : vector<32x32xf32>
    %2 = tpu.matmul %0, %1, %cst {dimension_numbers = #tpu.dot_dimension_numbers<[1], [0], [0], [1], [0, 0, 1, 1], [], []>} : vector<32x64xf32>, vector<64x32xf32>, vector<32x32xf32> -> vector<32x32xf32>
    %c320 = arith.constant 320 : index
    %c0_3 = arith.constant 0 : index
    %3 = vector.load %arg2[%c320, %c0_3] : memref<328x128xf32, #tpu.memory_space<vmem>>, vector<1x32xf32>
    %4 = vector.broadcast %3 : vector<1x32xf32> to vector<32x32xf32>
    %5 = arith.addf %2, %4 : vector<32x32xf32>
    %c64 = arith.constant 64 : index
    %c0_4 = arith.constant 0 : index
    %6 = vector.load %arg2[%c64, %c0_4] : memref<328x128xf32, #tpu.memory_space<vmem>>, vector<32x32xf32>
    %cst_5 = arith.constant dense<0.000000e+00> : vector<32x32xf32>
    %7 = tpu.matmul %5, %6, %cst_5 {dimension_numbers = #tpu.dot_dimension_numbers<[1], [0], [0], [1], [0, 0, 1, 1], [], []>} : vector<32x32xf32>, vector<32x32xf32>, vector<32x32xf32> -> vector<32x32xf32>
    %c96 = arith.constant 96 : index
    %c0_6 = arith.constant 0 : index
    %8 = vector.load %arg2[%c96, %c0_6] : memref<328x128xf32, #tpu.memory_space<vmem>>, vector<32x32xf32>
    %cst_7 = arith.constant dense<0.000000e+00> : vector<32x32xf32>
    %9 = tpu.matmul %5, %8, %cst_7 {dimension_numbers = #tpu.dot_dimension_numbers<[1], [0], [0], [1], [0, 0, 1, 1], [], []>} : vector<32x32xf32>, vector<32x32xf32>, vector<32x32xf32> -> vector<32x32xf32>
    %c128 = arith.constant 128 : index
    %c0_8 = arith.constant 0 : index
    %10 = vector.load %arg2[%c128, %c0_8] : memref<328x128xf32, #tpu.memory_space<vmem>>, vector<32x32xf32>
    %cst_9 = arith.constant dense<0.000000e+00> : vector<32x32xf32>
    %11 = tpu.matmul %5, %10, %cst_9 {dimension_numbers = #tpu.dot_dimension_numbers<[1], [0], [0], [1], [0, 0, 1, 1], [], []>} : vector<32x32xf32>, vector<32x32xf32>, vector<32x32xf32> -> vector<32x32xf32>
    %c0_10 = arith.constant 0 : index
    %c0_11 = arith.constant 0 : index
    %12 = vector.load %arg1[%c0_10, %c0_11] : memref<48x32xf32, #tpu.memory_space<vmem>>, vector<24x32xf32>
    %c24 = arith.constant 24 : index
    %c0_12 = arith.constant 0 : index
    %13 = vector.load %arg1[%c24, %c0_12] : memref<48x32xf32, #tpu.memory_space<vmem>>, vector<24x32xf32>
    %cst_13 = arith.constant dense<0.000000e+00> : vector<24x32xf32>
    %14 = tpu.matmul %13, %7, %cst_13 {dimension_numbers = #tpu.dot_dimension_numbers<[1], [1], [0], [0], [0, 0, 1, 0], [], []>} : vector<24x32xf32>, vector<32x32xf32>, vector<24x32xf32> -> vector<24x32xf32>
    %15 = tpu.iota {dimensions = array<i32: 0>} : vector<24x32xi32>
    %c12_i32 = arith.constant 12 : i32
    %16 = vector.broadcast %c12_i32 : i32 to vector<24x32xi32>
    %17 = arith.cmpi sge, %15, %16 : vector<24x32xi32>
    %18 = tpu.iota {dimensions = array<i32: 1>} : vector<24x32xi32>
    %c16_i32 = arith.constant 16 : i32
    %19 = vector.broadcast %c16_i32 : i32 to vector<24x32xi32>
    %20 = arith.cmpi sge, %18, %19 : vector<24x32xi32>
    %21 = arith.xori %17, %20 : vector<24x32xi1>
    %cst_14 = arith.constant dense<true> : vector<24x32xi1>
    %22 = arith.xori %21, %cst_14 : vector<24x32xi1>
    %cst_15 = arith.constant -1.000000e+30 : f32
    %23 = vector.broadcast %cst_15 : f32 to vector<24x32xf32>
    %24 = arith.select %22, %14, %23 : vector<24x32xi1>, vector<24x32xf32>
    %cst_16 = arith.constant dense<0xFF800000> : vector<24xf32>
    %25 = vector.multi_reduction <maximumf>, %24, %cst_16 [1] : vector<24x32xf32> to vector<24xf32>
    %26 = vector.shape_cast %25 : vector<24xf32> to vector<24x1xf32>
    %27 = vector.broadcast %26 : vector<24x1xf32> to vector<24x32xf32>
    %28 = arith.subf %24, %27 : vector<24x32xf32>
    %29 = math.exp %28 : vector<24x32xf32>
    %cst_17 = arith.constant dense<0.000000e+00> : vector<24xf32>
    %30 = vector.multi_reduction <add>, %29, %cst_17 [1] : vector<24x32xf32> to vector<24xf32>
    %31 = vector.shape_cast %30 : vector<24xf32> to vector<24x1xf32>
    %32 = vector.broadcast %31 : vector<24x1xf32> to vector<24x32xf32>
    %33 = arith.divf %29, %32 : vector<24x32xf32>
    %cst_18 = arith.constant dense<0.000000e+00> : vector<24x32xf32>
    %34 = tpu.matmul %33, %9, %cst_18 {dimension_numbers = #tpu.dot_dimension_numbers<[1], [0], [0], [1], [0, 0, 1, 1], [], []>} : vector<24x32xf32>, vector<32x32xf32>, vector<24x32xf32> -> vector<24x32xf32>
    %c160 = arith.constant 160 : index
    %c0_19 = arith.constant 0 : index
    %35 = vector.load %arg2[%c160, %c0_19] : memref<328x128xf32, #tpu.memory_space<vmem>>, vector<32x32xf32>
    %cst_20 = arith.constant dense<0.000000e+00> : vector<24x32xf32>
    %36 = tpu.matmul %34, %35, %cst_20 {dimension_numbers = #tpu.dot_dimension_numbers<[1], [0], [0], [1], [0, 0, 1, 1], [], []>} : vector<24x32xf32>, vector<32x32xf32>, vector<24x32xf32> -> vector<24x32xf32>
    %37 = arith.addf %12, %36 : vector<24x32xf32>
    %c192 = arith.constant 192 : index
    %c0_21 = arith.constant 0 : index
    %38 = vector.load %arg2[%c192, %c0_21] : memref<328x128xf32, #tpu.memory_space<vmem>>, vector<32x64xf32>
    %cst_22 = arith.constant dense<0.000000e+00> : vector<24x64xf32>
    %39 = tpu.matmul %37, %38, %cst_22 {dimension_numbers = #tpu.dot_dimension_numbers<[1], [0], [0], [1], [0, 0, 1, 1], [], []>} : vector<24x32xf32>, vector<32x64xf32>, vector<24x64xf32> -> vector<24x64xf32>
    %c321 = arith.constant 321 : index
    %c0_23 = arith.constant 0 : index
    %40 = vector.load %arg2[%c321, %c0_23] : memref<328x128xf32, #tpu.memory_space<vmem>>, vector<1x64xf32>
    %41 = vector.broadcast %40 : vector<1x64xf32> to vector<24x64xf32>
    %42 = arith.addf %39, %41 : vector<24x64xf32>
    %cst_24 = arith.constant 0.000000e+00 : f32
    %43 = vector.broadcast %cst_24 : f32 to vector<24x64xf32>
    %44 = arith.maximumf %42, %43 : vector<24x64xf32>
    %c224 = arith.constant 224 : index
    %c0_25 = arith.constant 0 : index
    %45 = vector.load %arg2[%c224, %c0_25] : memref<328x128xf32, #tpu.memory_space<vmem>>, vector<64x32xf32>
    %cst_26 = arith.constant dense<0.000000e+00> : vector<24x32xf32>
    %46 = tpu.matmul %44, %45, %cst_26 {dimension_numbers = #tpu.dot_dimension_numbers<[1], [0], [0], [1], [0, 0, 1, 1], [], []>} : vector<24x64xf32>, vector<64x32xf32>, vector<24x32xf32> -> vector<24x32xf32>
    %47 = arith.addf %37, %46 : vector<24x32xf32>
    %c322 = arith.constant 322 : index
    %c0_27 = arith.constant 0 : index
    %48 = vector.load %arg2[%c322, %c0_27] : memref<328x128xf32, #tpu.memory_space<vmem>>, vector<1x32xf32>
    %49 = vector.broadcast %48 : vector<1x32xf32> to vector<24x32xf32>
    %50 = arith.addf %47, %49 : vector<24x32xf32>
    %cst_28 = arith.constant dense<0.000000e+00> : vector<24x32xf32>
    %51 = tpu.matmul %50, %11, %cst_28 {dimension_numbers = #tpu.dot_dimension_numbers<[1], [1], [0], [0], [0, 0, 1, 0], [], []>} : vector<24x32xf32>, vector<32x32xf32>, vector<24x32xf32> -> vector<24x32xf32>
    %c0_29 = arith.constant 0 : index
    %c0_30 = arith.constant 0 : index
    %52 = vector.load %arg3[%c0_29, %c0_30] : memref<24x32xf32, #tpu.memory_space<vmem>>, vector<24x32xf32>
    tpu.vector_store %arg3[%c0_29, %c0_30], %51 {strides = array<i32>} : memref<24x32xf32, #tpu.memory_space<vmem>>, vector<24x32xf32>,
    %c288 = arith.constant 288 : index
    %c0_31 = arith.constant 0 : index
    %53 = vector.load %arg2[%c288, %c0_31] : memref<328x128xf32, #tpu.memory_space<vmem>>, vector<32x1xf32>
    %cst_32 = arith.constant dense<0.000000e+00> : vector<24x1xf32>
    %54 = tpu.matmul %50, %53, %cst_32 {dimension_numbers = #tpu.dot_dimension_numbers<[1], [0], [0], [1], [0, 0, 1, 1], [], []>} : vector<24x32xf32>, vector<32x1xf32>, vector<24x1xf32> -> vector<24x1xf32>
    %c0_33 = arith.constant 0 : index
    %c0_34 = arith.constant 0 : index
    %55 = vector.load %arg4[%c0_33, %c0_34] : memref<24x1xf32, #tpu.memory_space<vmem>>, vector<24x1xf32>
    tpu.vector_store %arg4[%c0_33, %c0_34], %54 {strides = array<i32>} : memref<24x1xf32, #tpu.memory_space<vmem>>, vector<24x1xf32>,
    return
  }
}

</mosaic_0001>

<bundles_post_ra>
// kernel: tile.17
= control target key start
LH: loop header
LB: loop body
LE: loop exit
PB: predicated region body
PF: predicated region fallthrough
CT: control target
= control target key end

     0   :  { %vm3_vm0 = vcmask 261120   ;;  %s60_s0 = inlined_call_operand.vmem [shape: f32[2,12,32], index: 0, kind: input, shape index: {}]   ;;  %s61_s1 = inlined_call_operand.vmem [shape: f32[24,32], index: 1, kind: output, shape index: {}]  }
   0x1   :  { %v2_v0 = vld [vmem:[%s60_s0] sm:$0xff]   ;;  %v20_v1 = vld [vmem:[%s60_s0 + $0x8] sm:$0xf]   ;;  %v22_v2 = vld [vmem:[%s60_s0 + $0x10] sm:$0xff]  }
   0x2   :  { %4 = vst.msk [vmem:[%s61_s1] sm:$0xff] %vm3_vm0, %v2_v0   ;;  %21 = vst.msk [vmem:[%s61_s1 + $0x8] sm:$0xf] %vm3_vm0, %v20_v1   ;;  %v24_v3 = vld [vmem:[%s60_s0 + $0x18] sm:$0xf]  }
   0x3   :  { %23 = vst.msk [vmem:[%s61_s1 + $0xc] sm:$0xff] %vm3_vm0, %v22_v2   ;;  %25 = vst.msk [vmem:[%s61_s1 + $0x14] sm:$0xf] %vm3_vm0, %v24_v3  }

// kernel: squeeze.1
= control target key start
LH: loop header
LB: loop body
LE: loop exit
PB: predicated region body
PF: predicated region fallthrough
CT: control target
= control target key end

     0   :  { %s77_s0 = inlined_call_operand.vmem [shape: f32[6], index: 0, kind: input, shape index: {}]   ;;  %s78_s1 = inlined_call_operand.hbm [shape: f32[2,3], index: 1, kind: output, shape index: {}]  }
   0x1   :  { %v6_v0 = vld [vmem:[%s77_s0] sm:$0x1] }
   0x2   :  { %2 = vsyncpa [#allocation1], 0  ;;  %7 = vst [vmem:[#allocation3] sm:$0x1] %v6_v0  ;;  %vm9_vm0 = vcmask 23552   ;;  %s59_s0 = smov 125  }
   0x3   :  { %s60_s8 = smov [#allocation0]  }
   0x4   :  { %s29_s9 = sshll.u32 %s60_s8, 4  ;;  %s30_s9 = int_to_ptr.vmem [resolvable:$true] %s29_s9 }
   0x5   :  { %s37_s10 = scalar_lea.vmem %s30_s9, 32  ;;  %p42_p1 = scmp.lt.s32.totalorder %s30_s9, %s30_s9 }
   0x6   :  { %p38_p0 = scmp.ne.s32.totalorder %s30_s9, %s37_s10  ;;  %p43_p2 = scmp.lt.s32.totalorder %s37_s10, %s37_s10 }
   0x8   :  { %p44_p3 = por %p43_p2, %p42_p1 }
   0x9   :  { %v11_v1 = vld [vmem:[#allocation3] sm:$0x1]  }
   0xa   :  { %v8_v2 = vld [vmem:[#allocation3] sm:$0x1]   ;;  %12 = vrot.lane.b32.xlu0 %v11_v1, %s59_s0  ;;  %p45_p4 = pnand %p44_p3, %p38_p0 }
   0xb   :  { %10 = vst.msk [vmem:[#allocation2] sm:$0x1] %vm9_vm0, %v8_v2  }
  0x7c   :  { %v13_v3 = vpop.permute.xlu0 %12  }
  0x7d   :  { %16 = vst.msk [vmem:[#allocation2 + $0x1] sm:$0x1] %vm9_vm0, %v13_v3  }
  0x84   :  { %v21_v4 = vld [vmem:[#allocation2] sm:$0x3] }
  0x85   :  { %24 = vst [vmem:[#allocation0] sm:$0x3] %v21_v4 }
  0x86   :  { %48 = shalt.err (!%p45_p4)
}
  0x87   :  { %32 = dma.vmem_to_hbm [thread:$0]  %s30_s9, 32, %s78_s1, [#allocation1]  }
  0x88   :  { %57 = dma.done.wait [#allocation1], 32  }
  0x89   :  { %58 = vsyncadd [#allocation1], 4294967264 }
  0x8a   :  { %34 = vsyncpa [#allocation1], 1 }

// kernel: _forward_impl.1
= control target key start
LH: loop header
LB: loop body
LE: loop exit
PB: predicated region body
PF: predicated region fallthrough
CT: control target
= control target key end

     0   :  { %vm33_vm0 = vcmask 523264   ;;  %vm135_vm1 = vcmask 261120   ;;  %v1507_v33 = vmov 0.0   ;;  %vm1508_vm2 = vmmov 0   ;;  %s1859_s2 = inlined_call_operand.vmem [shape: f32[328,128], index: 2, kind: input, shape index: {}]   ;;  %s1860_s0 = inlined_call_operand.vmem [shape: f32[32,64], index: 0, kind: input, shape index: {}]   ;;  %s1861_s1 = inlined_call_operand.vmem [shape: f32[48,32], index: 1, kind: input, shape index: {}]   ;;  %s1862_s3 = inlined_call_operand.vmem [shape: f32[24,32], index: 3, kind: output, shape index: {0}]   ;;  %s1863_s4 = inlined_call_operand.vmem [shape: f32[24,1], index: 4, kind: output, shape index: {1}]  }
   0x1   :  { %v27_v0 = vld [vmem:[%s1859_s2 + $0x38] sm:$0xff]  ;;  %v26_v1 = vld [vmem:[%s1859_s2 + $0x30] sm:$0xff]  ;;  %v25_v2 = vld [vmem:[%s1859_s2 + $0x28] sm:$0xff]  ;;  %v518_v45 = vlaneseq  ;;  %vm1509_vm5 = vmmov 1   ;;  %vm1152_vm11 = vcmask 7168  }
   0x2   :  { %1301 = vmatprep.subr.mxu0 %v27_v0  ;;  %v16_v3 = vld [vmem:[%s1860_s0] sm:$0xff]  ;;  %v134_v5 = vld [vmem:[%s1859_s2 + $0x58] sm:$0xff]  ;;  %v22_v7 = vld [vmem:[%s1859_s2 + $0x10] sm:$0xff] }
   0x3   :  { %1302 = vmatpush3.msra.mxu0 %v27_v0  ;;  %1317 = vmatprep.mubr.msk.f32.mxu0 %vm33_vm0, %v16_v3  ;;  %v24_v4 = vld [vmem:[%s1859_s2 + $0x20] sm:$0xff]  ;;  %v23_v6 = vld [vmem:[%s1859_s2 + $0x18] sm:$0xff]  ;;  %v21_v8 = vld [vmem:[%s1859_s2 + $0x8] sm:$0xff]  ;;  %v519_v47 = vshrl.u32 %v518_v45, 7  ;;  %v526_v49 = vand.u32 127, %v518_v45 }
   0x4   :  { %1303 = vmatprep.subr.mxu0 %v26_v1  ;;  %1323 = vmatprep.subr.mxu1 %v134_v5  ;;  %v20_v9 = vld [vmem:[%s1859_s2] sm:$0xff]  ;;  %v17_v10 = vld [vmem:[%s1860_s0 + $0x8] sm:$0xff]  ;;  %v18_v11 = vld [vmem:[%s1860_s0 + $0x10] sm:$0xff] }
   0x5   :  { %1304 = vmatpush3.msra.mxu0 %v26_v1  ;;  %1324 = vmatpush3.msra.mxu1 %v134_v5  ;;  %v19_v12 = vld [vmem:[%s1860_s0 + $0x18] sm:$0xff]  ;;  %v133_v13 = vld [vmem:[%s1859_s2 + $0x50] sm:$0xff]  ;;  %v132_v14 = vld [vmem:[%s1859_s2 + $0x48] sm:$0xff]  ;;  %v520_v50 = vadd.s32 8, %v519_v47  ;;  %vm527_vm3 = vcmp.ge.s32.totalorder %v526_v49, 16 }
   0x6   :  { %1305 = vmatprep.subr.mxu0 %v25_v2  ;;  %1325 = vmatprep.subr.mxu1 %v133_v13  ;;  %v131_v15 = vld [vmem:[%s1859_s2 + $0x40] sm:$0xff]  ;;  %v236_v16 = vld [vmem:[%s1859_s2 + $0x78] sm:$0xff]  ;;  %v235_v23 = vld [vmem:[%s1859_s2 + $0x70] sm:$0xff] }
   0x7   :  { %1306 = vmatpush3.msra.mxu0 %v25_v2  ;;  %1326 = vmatpush3.msra.mxu1 %v133_v13  ;;  %v1164_v18 = vld [vmem:[%s1859_s2 + $0x140] ss:$0 sm:$0xff]  ;;  %v234_v26 = vld [vmem:[%s1859_s2 + $0x68] sm:$0xff]  ;;  %v325_v29 = vld [vmem:[%s1859_s2 + $0x98] sm:$0xff]  ;;  %vm523_vm4 = vcmp.ge.s32.totalorder %v520_v50, 12 }
   0x8   :  { %1307 = vmatprep.subr.mxu0 %v24_v4  ;;  %1327 = vmatprep.subr.mxu1 %v132_v14  ;;  %v233_v28 = vld [vmem:[%s1859_s2 + $0x60] sm:$0xff]  ;;  %v324_v30 = vld [vmem:[%s1859_s2 + $0x90] sm:$0xff]  ;;  %v323_v31 = vld [vmem:[%s1859_s2 + $0x88] sm:$0xff] }
   0x9   :  { %1308 = vmatpush3.msra.mxu0 %v24_v4  ;;  %1328 = vmatpush3.msra.mxu1 %v132_v14  ;;  %v322_v32 = vld [vmem:[%s1859_s2 + $0x80] sm:$0xff]  ;;  %v414_v42 = vld [vmem:[%s1861_s1 + $0x18] sm:$0xff]  ;;  %v416_v44 = vld [vmem:[%s1861_s1 + $0x28] sm:$0xff] }
   0xa   :  { %1309 = vmatprep.subr.mxu0 %v23_v6  ;;  %1329 = vmatprep.subr.mxu1 %v131_v15  ;;  %v415_v43 = vld [vmem:[%s1861_s1 + $0x20] sm:$0xff]  ;;  %vm531_vm6 = vmxor %vm527_vm3, %vm1509_vm5 }
   0xb   :  { %1310 = vmatpush3.msra.mxu0 %v23_v6  ;;  %1330 = vmatpush3.msra.mxu1 %v131_v15  ;;  %vm529_vm7 = vmxor %vm523_vm4, %vm527_vm3  ;;  %v411_v45 = vld [vmem:[%s1861_s1] sm:$0xff] }
   0xc   :  { %1311 = vmatprep.subr.mxu0 %v22_v7  ;;  %1337 = vmatprep.subr.mxu1 %v236_v16  ;;  %vm532_vm8 = vmxor %vm529_vm7, %vm1509_vm5 }
   0xd   :  { %1312 = vmatpush3.msra.mxu0 %v22_v7  ;;  %vm530_vm9 = vmxor %vm1509_vm5, %vm527_vm3 }
   0xe   :  { %1313 = vmatprep.subr.mxu0 %v21_v8  ;;  %vm533_vm10 = vmxor %vm530_vm9, %vm1509_vm5 }
   0xf   :  { %1314 = vmatpush3.msra.mxu0 %v21_v8 }
  0x10   :  { %1315 = vmatprep.subr.mxu0 %v20_v9 }
  0x11   :  { %1316 = vmatpush3.msra.mxu0 %v20_v9 }
  0x12   :  { %1318 = vmatmul.mubr.msk.f32.vlgmr.msra.gmra.mxu0 %vm33_vm0, %v17_v10  ;;  %1382 = vmatprep.subr.mxu0 %v1507_v33 }
  0x13   :  { %1320 = vmatprep.mubr.msk.f32.mxu0 %vm33_vm0, %v18_v11 }
  0x16   :  { %1321 = vmatmul.mubr.msk.f32.gmra.mxu0 %vm33_vm0, %v19_v12 }
  0x17   :  { %1390 = vmatprep.mubr.msk.f32.mxu0 %vm1508_vm2, %v1507_v33 }
  0xd2   :  { %v1319_v17 = vpop.f32.mrf.mxu0 }
  0xd3   :  { %v118_v21 = vadd.f32 %v1319_v17, %v1164_v18 }
  0xd4   :  { %v112_v19 = vpop.f32.mrf.mxu0 }
  0xd5   :  { %v113_v20 = vadd.f32 %v1164_v18, %v112_v19 }
  0xd6   :  { %v1322_v22 = vpop.f32.mrf.mxu0 }
  0xd7   :  { %1331 = vmatprep.mubr.msk.f32.mxu1 %vm135_vm1, %v113_v20  ;;  %v128_v27 = vadd.f32 %v1322_v22, %v1164_v18  ;;  %v661_v22 = vld [vmem:[%s1859_s2 + $0xb0] sm:$0xff] }
  0xd8   :  { %v122_v24 = vpop.f32.mrf.mxu0  ;;  %1332 = vmatmul.mubr.msk.f32.vlgmr.msra.gmra.mxu1 %vm135_vm1, %v118_v21 }
  0xd9   :  { %v123_v25 = vadd.f32 %v1164_v18, %v122_v24  ;;  %1338 = vmatpush3.msra.mxu1 %v236_v16 }
  0xda   :  { %1339 = vmatprep.subr.mxu1 %v235_v23 }
  0xdb   :  { %1334 = vmatprep.mubr.msk.f32.mxu1 %vm135_vm1, %v123_v25  ;;  %1340 = vmatpush3.msra.mxu1 %v235_v23 }
  0xdc   :  { %1335 = vmatmul.mubr.msk.f32.gmra.mxu1 %vm135_vm1, %v128_v27  ;;  %1341 = vmatprep.subr.mxu1 %v234_v26 }
  0xdd   :  { %1342 = vmatpush3.msra.mxu1 %v234_v26  ;;  %1345 = vmatprep.mubr.msk.f32.mxu1 %vm135_vm1, %v113_v20  ;;  %v659_v26 = vld [vmem:[%s1859_s2 + $0xa0] sm:$0xff] }
  0xde   :  { %1343 = vmatprep.subr.mxu1 %v233_v28 }
  0xdf   :  { %1344 = vmatpush3.msra.mxu1 %v233_v28 }
  0xe0   :  { %1346 = vmatmul.mubr.msk.f32.vlgmr.msra.gmra.mxu1 %vm135_vm1, %v118_v21  ;;  %1351 = vmatprep.subr.mxu1 %v325_v29 }
  0xe1   :  { %1348 = vmatprep.mubr.msk.f32.mxu1 %vm135_vm1, %v123_v25  ;;  %1352 = vmatpush3.msra.mxu1 %v325_v29  ;;  %v758_v29 = vld [vmem:[%s1859_s2 + $0xd8] sm:$0xff] }
  0xe2   :  { %1353 = vmatprep.subr.mxu1 %v324_v30 }
  0xe3   :  { %1354 = vmatpush3.msra.mxu1 %v324_v30  ;;  %v757_v30 = vld [vmem:[%s1859_s2 + $0xd0] sm:$0xff] }
  0xe4   :  { %1349 = vmatmul.mubr.msk.f32.gmra.mxu1 %vm135_vm1, %v128_v27  ;;  %1355 = vmatprep.subr.mxu1 %v323_v31 }
  0xe5   :  { %1356 = vmatpush3.msra.mxu1 %v323_v31  ;;  %1359 = vmatprep.mubr.msk.f32.mxu1 %vm135_vm1, %v113_v20  ;;  %v756_v31 = vld [vmem:[%s1859_s2 + $0xc8] sm:$0xff] }
  0xe6   :  { %1357 = vmatprep.subr.mxu1 %v322_v32 }
  0xe7   :  { %1358 = vmatpush3.msra.mxu1 %v322_v32 }
  0xe8   :  { %1360 = vmatmul.mubr.msk.f32.vlgmr.msra.gmra.mxu1 %vm135_vm1, %v118_v21  ;;  %1365 = vmatprep.subr.mxu1 %v1507_v33  ;;  %v662_v21 = vld [vmem:[%s1859_s2 + $0xb8] sm:$0xff] }
  0xe9   :  { %1362 = vmatprep.mubr.msk.f32.mxu1 %vm135_vm1, %v123_v25  ;;  %v660_v25 = vld [vmem:[%s1859_s2 + $0xa8] sm:$0xff] }
  0xec   :  { %1363 = vmatmul.mubr.msk.f32.gmra.mxu1 %vm135_vm1, %v128_v27 }
  0xed   :  { %1373 = vmatprep.mubr.msk.f32.mxu1 %vm1508_vm2, %v1507_v33 }
 0x198   :  { %v1333_v34 = vpop.f32.mrf.mxu1 }
 0x19a   :  { %v214_v35 = vpop.f32.mrf.mxu1 }
 0x19c   :  { %v1336_v36 = vpop.f32.mrf.mxu1 }
 0x19d   :  { %1366 = vmatpush3.xpose.msk.msra.mxu1 %vm135_vm1, %v1336_v36 }
 0x19e   :  { %v224_v37 = vpop.f32.mrf.mxu1  ;;  %1367 = vmatprep.subr.mxu1 %v1507_v33 }
 0x1a0   :  { %v1347_v38 = vpop.f32.mrf.mxu1 }
 0x1a1   :  { %1368 = vmatpush3.xpose.msk.msra.mxu1 %vm135_vm1, %v224_v37 }
 0x1a2   :  { %v303_v39 = vpop.f32.mrf.mxu1  ;;  %1369 = vmatprep.subr.mxu1 %v1507_v33 }
 0x1a4   :  { %v1350_v40 = vpop.f32.mrf.mxu1 }
 0x1a5   :  { %1370 = vmatpush3.xpose.msk.msra.mxu1 %vm135_vm1, %v1333_v34  ;;  %1383 = vmatpush3.msra.mxu0 %v1350_v40  ;;  %v863_v40 = vld [vmem:[%s1859_s2 + $0x118] sm:$0xff] }
 0x1a6   :  { %v313_v41 = vpop.f32.mrf.mxu1  ;;  %1384 = vmatprep.subr.mxu0 %v1507_v33  ;;  %1371 = vmatprep.subr.mxu1 %v1507_v33 }
 0x1a7   :  { %1385 = vmatpush3.msra.mxu0 %v313_v41  ;;  %v862_v41 = vld [vmem:[%s1859_s2 + $0x110] sm:$0xff] }
 0x1a8   :  { %1386 = vmatprep.subr.mxu0 %v1507_v33  ;;  %v1662_v46 = vpop.f32.mrf.mxu1 }
 0x1a9   :  { %1372 = vmatpush3.xpose.msk.msra.mxu1 %vm135_vm1, %v214_v35  ;;  %1387 = vmatpush3.msra.mxu0 %v1347_v38 }
 0x1aa   :  { %1388 = vmatprep.subr.mxu0 %v1507_v33  ;;  %1416 = vmatprep.subr.mxu1 %v1507_v33  ;;  %v1664_v48 = vpop.f32.mrf.mxu1 }
 0x1ab   :  { %1389 = vmatpush3.msra.mxu0 %v303_v39  ;;  %v755_v39 = vld [vmem:[%s1859_s2 + $0xc0] sm:$0xff] }
 0x1ac   :  { %1374 = vmatmul.mubr.msk.f32.vlgmr.msra.gmra.mxu1 %vm135_vm1, %v414_v42  ;;  %1399 = vmatprep.subr.mxu0 %v1507_v33  ;;  %v1666_v51 = vpop.f32.mrf.mxu1  ;;  %v861_v42 = vld [vmem:[%s1859_s2 + $0x108] sm:$0xff] }
 0x1ad   :  { %1376 = vmatprep.mubr.msk.f32.mxu1 %vm1508_vm2, %v1507_v33  ;;  %1417 = vmatpush3.msra.mxu1 %v758_v29 }
 0x1ae   :  { %v1668_v52 = vpop.f32.mrf.mxu1  ;;  %1418 = vmatprep.subr.mxu1 %v1507_v33 }
 0x1af   :  { %1419 = vmatpush3.msra.mxu1 %v757_v30 }
 0x1b0   :  { %1377 = vmatmul.mubr.msk.f32.gmra.mxu1 %vm135_vm1, %v415_v43  ;;  %1420 = vmatprep.subr.mxu1 %v1507_v33  ;;  %v860_v43 = vld [vmem:[%s1859_s2 + $0x100] sm:$0xff] }
 0x1b1   :  { %1379 = vmatprep.mubr.msk.f32.mxu1 %vm1508_vm2, %v1507_v33  ;;  %1421 = vmatpush3.msra.mxu1 %v756_v31 }
 0x1b2   :  { %1422 = vmatprep.subr.mxu1 %v1507_v33 }
 0x1b3   :  { %1423 = vmatpush3.msra.mxu1 %v755_v39 }
 0x1b4   :  { %1380 = vmatmul.mubr.msk.f32.gmra.mxu1 %vm135_vm1, %v416_v44  ;;  %1458 = vmatprep.subr.mxu1 %v1507_v33  ;;  %v859_v44 = vld [vmem:[%s1859_s2 + $0xf8] sm:$0xff] }
 0x1b5   :  { %1424 = vmatprep.mubr.msk.f32.mxu1 %vm1508_vm2, %v1507_v33 }
 0x26c   :  { %v504_v53 = vpop.f32.mrf.mxu1 }
 0x26d   :  { %v534_v54 = vsel %vm531_vm6, %v504_v53, -1e+30  ;;  %v412_v53 = vld [vmem:[%s1861_s1 + $0x8] sm:$0xff] }
 0x26e   :  { %v1375_v55 = vpop.f32.mrf.mxu1  ;;  %v537_v56 = vsel %vm135_vm1, %v534_v54, -inf }
 0x26f   :  { %538 = vmax.xlane.f32.xlu0 %v537_v56 }
 0x270   :  { %v509_v57 = vpop.f32.mrf.mxu1 }
 0x271   :  { %v535_v58 = vsel %vm532_vm8, %v509_v57, -1e+30  ;;  %v413_v57 = vld [vmem:[%s1861_s1 + $0x10] sm:$0xff] }
 0x272   :  { %v1378_v59 = vpop.f32.mrf.mxu1  ;;  %v540_v60 = vsel %vm135_vm1, %v535_v58, -inf }
 0x273   :  { %541 = vmax.xlane.f32.xlu0 %v540_v60  ;;  %v857_v60 = vld [vmem:[%s1859_s2 + $0xe8] sm:$0xff] }
 0x274   :  { %v514_v61 = vpop.f32.mrf.mxu1 }
 0x275   :  { %v536_v62 = vsel %vm533_vm10, %v514_v61, -1e+30 }
 0x276   :  { %v1381_v63 = vpop.f32.mrf.mxu1  ;;  %v543_v0 = vsel %vm135_vm1, %v536_v62, -inf }
 0x277   :  { %544 = vmax.xlane.f32.xlu1 %v543_v0 }
 0x2f8   :  { %v539_v1 = vpop.xlane.xlu0 %538 }
 0x2f9   :  { %v546_v2 = vsub.f32 %v534_v54, %v539_v1  ;;  %v1071_v1 = vld [vmem:[%s1859_s2 + $0x138] sm:$0xff] }
 0x2fb   :  { %v549_v3 = vmul.f32 1.442695, %v546_v2 }
 0x2fc   :  { %v542_v4 = vpop.xlane.xlu0 %541 }
 0x2fd   :  { %1495 = vpow2.f32 %v549_v3  ;;  %v547_v5 = vsub.f32 %v535_v58, %v542_v4  ;;  %v1070_v4 = vld [vmem:[%s1859_s2 + $0x130] sm:$0xff] }
 0x2ff   :  { %v551_v6 = vmul.f32 1.442695, %v547_v5 }
 0x300   :  { %v545_v7 = vpop.xlane.xlu1 %544 }
 0x301   :  { %1497 = vpow2.f32 %v551_v6  ;;  %v548_v8 = vsub.f32 %v536_v62, %v545_v7  ;;  %v1069_v7 = vld [vmem:[%s1859_s2 + $0x128] sm:$0xff] }
 0x303   :  { %v553_v9 = vmul.f32 1.442695, %v548_v8 }
 0x305   :  { %1499 = vpow2.f32 %v553_v9 }
 0x30a   :  { %v1496_v10 = vpop.eup %1495 }
 0x30b   :  { %v555_v11 = vsel %vm135_vm1, %v1496_v10, 0.0 }
 0x30c   :  { %556 = vadd.xlane.f32.xlu1 %v555_v11 }
 0x30e   :  { %v1498_v12 = vpop.eup %1497 }
 0x30f   :  { %v558_v13 = vsel %vm135_vm1, %v1498_v12, 0.0 }
 0x310   :  { %559 = vadd.xlane.f32.xlu0 %v558_v13 }
 0x312   :  { %v1500_v14 = vpop.eup %1499 }
 0x313   :  { %v561_v15 = vsel %vm135_vm1, %v1500_v14, 0.0 }
 0x314   :  { %562 = vadd.xlane.f32.xlu1 %v561_v15 }
 0x395   :  { %v557_v16 = vpop.xlane.xlu1 %556 }
 0x396   :  { %1501 = vrcp.f32 %v557_v16 }
 0x399   :  { %v560_v17 = vpop.xlane.xlu0 %559 }
 0x39a   :  { %1503 = vrcp.f32 %v560_v17 }
 0x39d   :  { %v563_v18 = vpop.xlane.xlu1 %562 }
 0x39e   :  { %1505 = vrcp.f32 %v563_v18 }
 0x3a3   :  { %v1502_v19 = vpop.eup %1501 }
 0x3a4   :  { %v565_v20 = vmul.f32 %v1502_v19, %v1496_v10 }
 0x3a6   :  { %1391 = vmatmul.mubr.msk.f32.vlgmr.msra.gmra.mxu0 %vm135_vm1, %v565_v20 }
 0x3a7   :  { %v1504_v23 = vpop.eup %1503  ;;  %1393 = vmatprep.mubr.msk.f32.mxu0 %vm1508_vm2, %v1507_v33  ;;  %1400 = vmatpush3.msra.mxu0 %v662_v21 }
 0x3a8   :  { %v567_v24 = vmul.f32 %v1504_v23, %v1498_v12  ;;  %1401 = vmatprep.subr.mxu0 %v1507_v33  ;;  %v1068_v12 = vld [vmem:[%s1859_s2 + $0x120] sm:$0xff] }
 0x3a9   :  { %1402 = vmatpush3.msra.mxu0 %v661_v22 }
 0x3aa   :  { %1394 = vmatmul.mubr.msk.f32.gmra.mxu0 %vm135_vm1, %v567_v24  ;;  %1403 = vmatprep.subr.mxu0 %v1507_v33 }
 0x3ab   :  { %v1506_v27 = vpop.eup %1505  ;;  %1396 = vmatprep.mubr.msk.f32.mxu0 %vm1508_vm2, %v1507_v33  ;;  %1404 = vmatpush3.msra.mxu0 %v660_v25 }
 0x3ac   :  { %v569_v28 = vmul.f32 %v1506_v27, %v1500_v14  ;;  %1405 = vmatprep.subr.mxu0 %v1507_v33  ;;  %v1201_v14 = vld [vmem:[%s1859_s2 + $0x142] ss:$0 sm:$0xff] }
 0x3ad   :  { %1406 = vmatpush3.msra.mxu0 %v659_v26 }
 0x3ae   :  { %1397 = vmatmul.mubr.msk.f32.gmra.mxu0 %vm135_vm1, %v569_v28  ;;  %1433 = vmatprep.subr.mxu0 %v1507_v33 }
 0x3af   :  { %1407 = vmatprep.mubr.msk.f32.mxu0 %vm1508_vm2, %v1507_v33 }
 0x466   :  { %v645_v32 = vpop.f32.mrf.mxu0 }
 0x467   :  { %1408 = vmatmul.mubr.msk.f32.vlgmr.msra.gmra.mxu0 %vm135_vm1, %v645_v32 }
 0x468   :  { %v1392_v34 = vpop.f32.mrf.mxu0  ;;  %1410 = vmatprep.mubr.msk.f32.mxu0 %vm1508_vm2, %v1507_v33  ;;  %1434 = vmatpush3.msra.mxu0 %v863_v40 }
 0x469   :  { %1435 = vmatprep.subr.mxu0 %v1507_v33 }
 0x46a   :  { %v650_v35 = vpop.f32.mrf.mxu0  ;;  %1436 = vmatpush3.msra.mxu0 %v862_v41 }
 0x46b   :  { %1411 = vmatmul.mubr.msk.f32.gmra.mxu0 %vm135_vm1, %v650_v35  ;;  %1437 = vmatprep.subr.mxu0 %v1507_v33 }
 0x46c   :  { %v1395_v36 = vpop.f32.mrf.mxu0  ;;  %1413 = vmatprep.mubr.msk.f32.mxu0 %vm1508_vm2, %v1507_v33  ;;  %1438 = vmatpush3.msra.mxu0 %v861_v42 }
 0x46d   :  { %1439 = vmatprep.subr.mxu0 %v1507_v33 }
 0x46e   :  { %v655_v37 = vpop.f32.mrf.mxu0  ;;  %1440 = vmatpush3.msra.mxu0 %v860_v43 }
 0x46f   :  { %1414 = vmatmul.mubr.msk.f32.gmra.mxu0 %vm135_vm1, %v655_v37  ;;  %1441 = vmatprep.subr.mxu0 %v1507_v33 }
 0x470   :  { %v1398_v38 = vpop.f32.mrf.mxu0  ;;  %1449 = vmatprep.mubr.msk.f32.mxu0 %vm1508_vm2, %v1507_v33  ;;  %1442 = vmatpush3.msra.mxu0 %v859_v44 }
 0x471   :  { %1443 = vmatprep.subr.mxu0 %v1507_v33 }
 0x527   :  { %v738_v47 = vpop.f32.mrf.mxu0 }
 0x528   :  { %v1749_v49 = vadd.f32 %v738_v47, %v411_v45 }
 0x529   :  { %v1409_v50 = vpop.f32.mrf.mxu0 }
 0x52a   :  { %1425 = vmatmul.mubr.msk.f32.vlgmr.msra.gmra.mxu1 %vm135_vm1, %v1749_v49 }
 0x52b   :  { %1459 = vmatpush3.xpose.msk.msra.mxu1 %vm135_vm1, %v1666_v51  ;;  %v743_v54 = vpop.f32.mrf.mxu0  ;;  %1427 = vmatprep.mubr.msk.f32.mxu1 %vm1508_vm2, %v1507_v33 }
 0x52c   :  { %v753_v55 = vadd.f32 %v743_v54, %v412_v53  ;;  %1460 = vmatprep.subr.mxu1 %v1507_v33 }
 0x52d   :  { %v1412_v56 = vpop.f32.mrf.mxu0 }
 0x52e   :  { %1428 = vmatmul.mubr.msk.f32.gmra.mxu1 %vm135_vm1, %v753_v55 }
 0x52f   :  { %1461 = vmatpush3.xpose.msk.msra.mxu1 %vm135_vm1, %v1668_v52  ;;  %v748_v58 = vpop.f32.mrf.mxu0  ;;  %1430 = vmatprep.mubr.msk.f32.mxu1 %vm1508_vm2, %v1507_v33  ;;  %v858_v52 = vld [vmem:[%s1859_s2 + $0xf0] sm:$0xff] }
 0x530   :  { %v754_v51 = vadd.f32 %v748_v58, %v413_v57  ;;  %1462 = vmatprep.subr.mxu1 %v1507_v33  ;;  %1444 = vmatpush3.msra.mxu0 %v858_v52 }
 0x531   :  { %v1415_v59 = vpop.f32.mrf.mxu0  ;;  %1445 = vmatprep.subr.mxu0 %v1507_v33 }
 0x532   :  { %1431 = vmatmul.mubr.msk.f32.gmra.mxu1 %vm135_vm1, %v754_v51  ;;  %1446 = vmatpush3.msra.mxu0 %v857_v60 }
 0x533   :  { %1463 = vmatpush3.xpose.msk.msra.mxu1 %vm135_vm1, %v1662_v46  ;;  %1466 = vmatprep.mubr.msk.f32.mxu1 %vm1508_vm2, %v1507_v33  ;;  %v856_v46 = vld [vmem:[%s1859_s2 + $0xe0] sm:$0xff] }
 0x534   :  { %1464 = vmatprep.subr.mxu1 %v1507_v33  ;;  %1447 = vmatprep.subr.mxu0 %v1507_v33 }
 0x535   :  { %1448 = vmatpush3.msra.mxu0 %v856_v46 }
 0x536   :  { %1475 = vmatprep.subr.mxu0 %v1507_v33 }
 0x537   :  { %1465 = vmatpush3.xpose.msk.msra.mxu1 %vm135_vm1, %v1664_v48  ;;  %v1194_v48 = vld [vmem:[%s1859_s2 + $0x141] ss:$0 sm:$0xff] }
 0x5ea   :  { %v839_v61 = vpop.f32.mrf.mxu1 }
 0x5eb   :  { %v840_v62 = vadd.f32 %v1194_v48, %v839_v61 }
 0x5ec   :  { %v1426_v63 = vpop.f32.mrf.mxu1 }
 0x5ed   :  { %v853_v0 = vmax.f32 %v840_v62, 0.0 }
 0x5ee   :  { %v844_v2 = vpop.f32.mrf.mxu1 }
 0x5ef   :  { %v845_v3 = vadd.f32 %v1194_v48, %v844_v2  ;;  %1450 = vmatmul.mubr.msk.f32.vlgmr.msra.gmra.mxu0 %vm33_vm0, %v853_v0 }
 0x5f0   :  { %v1429_v5 = vpop.f32.mrf.mxu1  ;;  %1452 = vmatprep.mubr.msk.f32.mxu0 %vm1508_vm2, %v1507_v33  ;;  %1476 = vmatpush3.msra.mxu0 %v1071_v1 }
 0x5f1   :  { %v854_v6 = vmax.f32 %v845_v3, 0.0  ;;  %1477 = vmatprep.subr.mxu0 %v1507_v33 }
 0x5f2   :  { %v849_v8 = vpop.f32.mrf.mxu1  ;;  %1478 = vmatpush3.msra.mxu0 %v1070_v4 }
 0x5f3   :  { %v850_v9 = vadd.f32 %v1194_v48, %v849_v8  ;;  %1453 = vmatmul.mubr.msk.f32.gmra.mxu0 %vm33_vm0, %v854_v6  ;;  %1479 = vmatprep.subr.mxu0 %v1507_v33 }
 0x5f4   :  { %v1432_v10 = vpop.f32.mrf.mxu1  ;;  %1455 = vmatprep.mubr.msk.f32.mxu0 %vm1508_vm2, %v1507_v33  ;;  %1480 = vmatpush3.msra.mxu0 %v1069_v7 }
 0x5f5   :  { %v855_v11 = vmax.f32 %v850_v9, 0.0  ;;  %1481 = vmatprep.subr.mxu0 %v1507_v33 }
 0x5f6   :  { %1482 = vmatpush3.msra.mxu0 %v1068_v12 }
 0x5f7   :  { %1456 = vmatmul.mubr.msk.f32.gmra.mxu0 %vm33_vm0, %v855_v11 }
 0x5f8   :  { %1483 = vmatprep.mubr.msk.f32.mxu0 %vm1508_vm2, %v1507_v33 }
 0x6af   :  { %v939_v13 = vpop.f32.mrf.mxu0 }
 0x6b0   :  { %v953_v15 = vadd.f32 %v939_v13, %v1749_v49 }
 0x6b1   :  { %v1451_v16 = vpop.f32.mrf.mxu0 }
 0x6b2   :  { %v961_v17 = vadd.f32 %v1201_v14, %v953_v15 }
 0x6b3   :  { %v944_v18 = vpop.f32.mrf.mxu0 }
 0x6b4   :  { %v954_v19 = vadd.f32 %v944_v18, %v753_v55  ;;  %1467 = vmatmul.mubr.msk.f32.vlgmr.msra.gmra.mxu1 %vm135_vm1, %v961_v17  ;;  %1484 = vmatmul.mubr.msk.f32.vlgmr.msra.gmra.mxu0 %vm135_vm1, %v961_v17 }
 0x6b5   :  { %v1454_v20 = vpop.f32.mrf.mxu0  ;;  %1469 = vmatprep.mubr.msk.f32.mxu1 %vm1508_vm2, %v1507_v33  ;;  %1486 = vmatprep.mubr.msk.f32.mxu0 %vm1508_vm2, %v1507_v33 }
 0x6b6   :  { %v962_v21 = vadd.f32 %v1201_v14, %v954_v19 }
 0x6b7   :  { %v949_v22 = vpop.f32.mrf.mxu0 }
 0x6b8   :  { %v955_v23 = vadd.f32 %v949_v22, %v754_v51  ;;  %1470 = vmatmul.mubr.msk.f32.gmra.mxu1 %vm135_vm1, %v962_v21  ;;  %1487 = vmatmul.mubr.msk.f32.gmra.mxu0 %vm135_vm1, %v962_v21 }
 0x6b9   :  { %v1457_v24 = vpop.f32.mrf.mxu0  ;;  %1472 = vmatprep.mubr.msk.f32.mxu1 %vm1508_vm2, %v1507_v33  ;;  %1489 = vmatprep.mubr.msk.f32.mxu0 %vm1508_vm2, %v1507_v33 }
 0x6ba   :  { %v963_v25 = vadd.f32 %v1201_v14, %v955_v23 }
 0x6bc   :  { %1473 = vmatmul.mubr.msk.f32.gmra.mxu1 %vm135_vm1, %v963_v25  ;;  %1490 = vmatmul.mubr.msk.f32.gmra.mxu0 %vm135_vm1, %v963_v25 }
 0x774   :  { %v1051_v26 = vpop.f32.mrf.mxu1  ;;  %v1138_v27 = vpop.f32.mrf.mxu0 }
 0x775   :  { %1065 = vst.msk [vmem:[%s1862_s3] sm:$0xff] %vm135_vm1, %v1051_v26 }
 0x776   :  { %1153 = vst.msk [vmem:[%s1863_s4] sm:$0xff] %vm1152_vm11, %v1138_v27  ;;  %v1468_v28 = vpop.f32.mrf.mxu1  ;;  %v1485_v33 = vpop.f32.mrf.mxu0 }
 0x778   :  { %v1056_v29 = vpop.f32.mrf.mxu1  ;;  %v1143_v30 = vpop.f32.mrf.mxu0 }
 0x779   :  { %1066 = vst.msk [vmem:[%s1862_s3 + $0x8] sm:$0xff] %vm135_vm1, %v1056_v29 }
 0x77a   :  { %1154 = vst.msk [vmem:[%s1863_s4 + $0x8] sm:$0xff] %vm1152_vm11, %v1143_v30  ;;  %v1471_v31 = vpop.f32.mrf.mxu1  ;;  %v1488_v32 = vpop.f32.mrf.mxu0 }
 0x77c   :  { %v1061_v34 = vpop.f32.mrf.mxu1  ;;  %v1148_v35 = vpop.f32.mrf.mxu0 }
 0x77d   :  { %1067 = vst.msk [vmem:[%s1862_s3 + $0x10] sm:$0xff] %vm135_vm1, %v1061_v34 }
 0x77e   :  { %1155 = vst.msk [vmem:[%s1863_s4 + $0x10] sm:$0xff] %vm1152_vm11, %v1148_v35  ;;  %v1474_v36 = vpop.f32.mrf.mxu1  ;;  %v1491_v37 = vpop.f32.mrf.mxu0 }

</bundles_post_ra>
